<compile_context>
chip_gen: v5e
topology: v5e:2x2
jax: 0.10.0
libtpu: 0.0.40
codegen_flags: <defaults>
</compile_context>

<pallas_src>
import functools

import jax
import jax.numpy as jnp
from jax.experimental import pallas as pl
from jax.experimental.pallas import tpu as pltpu


def _round_up(x, m):
    return ((x + m - 1) // m) * m


# --------------------------------------------------------------------------
# Kernel
# --------------------------------------------------------------------------
def _encoder_kernel(n_layers, x_ref, *refs):
    """Fused MLP forward for one batch tile.

    refs = (w_0 .. w_{L-1}, b_0 .. b_{L-1}, out_ref); every weight is already
    padded to its per-layer lane/sublane-aligned shape, biases are (1, out_pad).
    The last layer is the fused (mu | logvar) head (no ReLU).
    """
    w_refs = refs[:n_layers]
    b_refs = refs[n_layers:2 * n_layers]
    out_ref = refs[2 * n_layers]

    x = x_ref[...]
    for layer in range(n_layers):
        x = jnp.dot(x, w_refs[layer][...],
                    preferred_element_type=jnp.float32) + b_refs[layer][...]
        if layer < n_layers - 1:            # no ReLU on the fused head
            x = jnp.maximum(x, 0.0)
    out_ref[...] = x.astype(out_ref.dtype)


# --------------------------------------------------------------------------
# Parameter packing (one-time cost, done outside the forward pass)
# --------------------------------------------------------------------------
def _pad_to(a, rows, cols):
    a = jnp.asarray(a, jnp.float32)
    return jnp.pad(a, ((0, rows - a.shape[0]), (0, cols - a.shape[1])))


def pack_params(params, S_dim, P_dim):
    """params: [(W, b)] for hidden layers..., fc_mu, fc_logvar.

    W: (in_dim, out_dim), b: (out_dim,) or (1, out_dim).
    NOTE: PyTorch nn.Linear stores weight as (out_features, in_features); real
    checkpoints must be transposed before calling this, and the concat order
    of the first layer's input is exactly [S, P] as in the module.

    Returns (weights, biases, latent_dim): per-layer zero-padded weight/bias
    arrays (hidden layers..., fused mu|logvar head), each padded per-layer to
    128-lane-aligned shapes.
    """
    assert len(params) >= 2, "need fc_mu and fc_logvar"
    hidden = params[:-2]
    (w_mu, b_mu), (w_lv, b_lv) = params[-2], params[-1]
    latent = w_mu.shape[1]

    # fused (mu | logvar) head
    w_head = jnp.concatenate([jnp.asarray(w_mu, jnp.float32),
                              jnp.asarray(w_lv, jnp.float32)], axis=1)
    b_head = jnp.concatenate([jnp.reshape(jnp.asarray(b_mu, jnp.float32), (1, -1)),
                              jnp.reshape(jnp.asarray(b_lv, jnp.float32), (1, -1))],
                             axis=1)

    layer_ws = [w for (w, _) in hidden] + [w_head]
    layer_bs = [jnp.reshape(jnp.asarray(b, jnp.float32), (1, -1))
                for (_, b) in hidden] + [b_head]

    in_pad = _round_up(S_dim + P_dim, 128)      # lane-dense padded input width
    weights, biases = [], []
    prev_pad = in_pad
    for w, b in zip(layer_ws, layer_bs):
        out_pad = _round_up(w.shape[1], 128)    # per-layer padding (not max)
        weights.append(_pad_to(w, prev_pad, out_pad))
        biases.append(_pad_to(b, 1, out_pad))
        prev_pad = out_pad
    return tuple(weights), tuple(biases), int(latent)


# --------------------------------------------------------------------------
# Forward wrapper
# --------------------------------------------------------------------------
def _choose_tile_b(batch):
    """Batch tile: multiple of 8, <=512 rows, and >=2 grid steps when the
    batch allows it (so v7x can shard the 'parallel' axis across both TCs)."""
    bp = _round_up(batch, 8)
    if bp <= 8:
        return 8
    return min(512, _round_up((bp + 1) // 2, 8))


def _param_spec(shape, use_buffered):
    if use_buffered:
        # Constant index_map -> params are resident; single-buffer them.
        return pl.BlockSpec(shape, lambda i: (0, 0), pipeline_mode=pl.Buffered(1))
    return pl.BlockSpec(shape, lambda i: (0, 0))


@functools.partial(jax.jit, static_argnames=("latent_dim", "use_buffered"))
def _encoder_forward_impl(S, P, weights, biases, latent_dim, use_buffered):
    batch = S.shape[0]
    n_layers = len(weights)
    in_pad = weights[0].shape[0]
    out_pads = tuple(w.shape[1] for w in weights)
    head_pad = out_pads[-1]

    tile_b = _choose_tile_b(batch)
    batch_pad = _round_up(batch, tile_b)
    grid = (batch_pad // tile_b,)

    # Concat + pad in the wrapper (fused under this jit with the pallas_call).
    x = jnp.concatenate([S, P], axis=1).astype(jnp.float32)
    x = jnp.pad(x, ((0, batch_pad - batch), (0, in_pad - x.shape[1])))

    kernel = functools.partial(_encoder_kernel, n_layers)

    in_specs = ([pl.BlockSpec((tile_b, in_pad), lambda i: (i, 0))]
                + [_param_spec(tuple(w.shape), use_buffered) for w in weights]
                + [_param_spec(tuple(b.shape), use_buffered) for b in biases])

    # Advisory cost + explicit VMEM budget (v7x: 64 MiB physical).
    flops = 2 * batch_pad * sum(int(w.shape[0]) * int(w.shape[1]) for w in weights)
    param_bytes = 4 * (sum(int(w.size) for w in weights)
                       + sum(int(b.size) for b in biases))
    io_bytes = 4 * batch_pad * (in_pad + head_pad)
    act_bytes = 4 * tile_b * (in_pad + 2 * max(out_pads) + head_pad)
    vmem_need = param_bytes + 2 * 4 * tile_b * (in_pad + head_pad) + act_bytes
    vmem_limit = int(min(max(4 * vmem_need, 16 << 20), 48 << 20))

    out = pl.pallas_call(
        kernel,
        out_shape=jax.ShapeDtypeStruct((batch_pad, head_pad), jnp.float32),
        grid=grid,
        in_specs=in_specs,
        out_specs=pl.BlockSpec((tile_b, head_pad), lambda i: (i, 0)),
        compiler_params=pltpu.CompilerParams(
            dimension_semantics=("parallel",),
            vmem_limit_bytes=vmem_limit),
        cost_estimate=pl.CostEstimate(
            flops=int(flops), transcendentals=0,
            bytes_accessed=int(param_bytes + io_bytes)),
    )(x, *weights, *biases)

    mu = out[:batch, :latent_dim]
    logvar = out[:batch, latent_dim:2 * latent_dim]
    return mu, logvar


def encoder_forward(S, P, weights, biases, latent_dim):
    """Public forward: tries single-buffered resident params, falls back if the
    installed JAX build does not support BlockSpec pipeline_mode."""
    if hasattr(pl, "Buffered"):
        try:
            return _encoder_forward_impl(S, P, weights, biases,
                                         latent_dim=latent_dim, use_buffered=True)
        except Exception:
            pass
    return _encoder_forward_impl(S, P, weights, biases,
                                 latent_dim=latent_dim, use_buffered=False)


# --------------------------------------------------------------------------
# Synthetic params + pure-JAX reference
# --------------------------------------------------------------------------
def make_params(key, S_dim, P_dim, latent_dim, enc_hidden_dims):
    """Deterministic synthetic parameter init (mimics nn.Linear shapes, stored
    as (in_dim, out_dim))."""
    dims = [S_dim + P_dim] + list(enc_hidden_dims)
    params = []
    for i in range(len(dims) - 1):
        key, kw, kb = jax.random.split(key, 3)
        fan_in, fan_out = dims[i], dims[i + 1]
        w = jax.random.normal(kw, (fan_in, fan_out), jnp.float32) / jnp.sqrt(fan_in)
        b = jax.random.normal(kb, (1, fan_out), jnp.float32) * 0.01
        params.append((w, b))
    for _ in range(2):  # fc_mu, fc_logvar heads
        key, kw, kb = jax.random.split(key, 3)
        fan_in = dims[-1]
        w = jax.random.normal(kw, (fan_in, latent_dim), jnp.float32) / jnp.sqrt(fan_in)
        b = jax.random.normal(kb, (1, latent_dim), jnp.float32) * 0.01
        params.append((w, b))
    return params


def reference_forward(S, P, params):
    """Pure-JAX reference of the Encoder forward pass (matches the nn.Module)."""
    x = jnp.concatenate([S, P], axis=1)
    hidden = params[:-2]
    (w_mu, b_mu), (w_lv, b_lv) = params[-2], params[-1]
    for w, b in hidden:
        x = jnp.maximum(x @ w + b, 0.0)
    return x @ w_mu + b_mu, x @ w_lv + b_lv


if __name__ == "__main__":
    # Small shapes consistent with the module: S (batch, S_dim), P (batch, P_dim)
    batch, S_dim, P_dim = 2, 4, 3
    latent_dim = 8
    enc_hidden_dims = (32, 16)

    key = jax.random.PRNGKey(0)
    kS, kP, kparams = jax.random.split(key, 3)
    S = jax.random.normal(kS, (batch, S_dim), jnp.float32)
    P = jax.random.normal(kP, (batch, P_dim), jnp.float32)
    params = make_params(kparams, S_dim, P_dim, latent_dim, enc_hidden_dims)

    # One-time packing of parameters into per-layer padded slabs.
    weights, biases, latent = pack_params(params, S_dim, P_dim)
    weights, biases = jax.block_until_ready((weights, biases))

    mu, logvar = encoder_forward(S, P, weights, biases, latent)
    jax.block_until_ready((mu, logvar))

    mu_ref, logvar_ref = reference_forward(S, P, params)
    assert mu.shape == (batch, latent_dim) and logvar.shape == (batch, latent_dim)
    assert jnp.allclose(mu, mu_ref, atol=1e-4), "mu mismatch"
    assert jnp.allclose(logvar, logvar_ref, atol=1e-4), "logvar mismatch"

    print("KERNEL_OK")
</pallas_src>

<mosaic_0001>
module attributes {stable_mosaic.version = 11 : i64} {
  func.func @_encoder_kernel(%arg0: i32, %arg1: memref<8x128xf32, #tpu.memory_space<vmem>>, %arg2: memref<128x128xf32, #tpu.memory_space<vmem>>, %arg3: memref<128x128xf32, #tpu.memory_space<vmem>>, %arg4: memref<128x128xf32, #tpu.memory_space<vmem>>, %arg5: memref<1x128xf32, #tpu.memory_space<vmem>>, %arg6: memref<1x128xf32, #tpu.memory_space<vmem>>, %arg7: memref<1x128xf32, #tpu.memory_space<vmem>>, %arg8: memref<8x128xf32, #tpu.memory_space<vmem>>) attributes {dimension_semantics = [#tpu.dimension_semantics<parallel>], iteration_bounds = array<i64: 1>, scalar_prefetch = 0 : i64, scratch_operands = 0 : i64, tpu.core_type = #tpu.core_type<tc>, window_params = [{transform_indices = @transform_0, window_bounds = array<i64: 8, 128>}, {pipeline_mode = #tpu.pipeline_mode<synchronous>, transform_indices = @transform_1, window_bounds = array<i64: 128, 128>}, {pipeline_mode = #tpu.pipeline_mode<synchronous>, transform_indices = @transform_2, window_bounds = array<i64: 128, 128>}, {pipeline_mode = #tpu.pipeline_mode<synchronous>, transform_indices = @transform_3, window_bounds = array<i64: 128, 128>}, {pipeline_mode = #tpu.pipeline_mode<synchronous>, transform_indices = @transform_4, window_bounds = array<i64: 1, 128>}, {pipeline_mode = #tpu.pipeline_mode<synchronous>, transform_indices = @transform_5, window_bounds = array<i64: 1, 128>}, {pipeline_mode = #tpu.pipeline_mode<synchronous>, transform_indices = @transform_6, window_bounds = array<i64: 1, 128>}, {transform_indices = @transform_7, window_bounds = array<i64: 8, 128>}]} {
    %c0 = arith.constant 0 : index
    %c0_0 = arith.constant 0 : index
    %0 = vector.load %arg1[%c0, %c0_0] : memref<8x128xf32, #tpu.memory_space<vmem>>, vector<8x128xf32>
    %c0_1 = arith.constant 0 : index
    %c0_2 = arith.constant 0 : index
    %1 = vector.load %arg2[%c0_1, %c0_2] : memref<128x128xf32, #tpu.memory_space<vmem>>, vector<128x128xf32>
    %cst = arith.constant dense<0.000000e+00> : vector<8x128xf32>
    %2 = tpu.matmul %0, %1, %cst {dimension_numbers = #tpu.dot_dimension_numbers<[1], [0], [0], [1], [0, 0, 1, 1], [], []>} : vector<8x128xf32>, vector<128x128xf32>, vector<8x128xf32> -> vector<8x128xf32>
    %c0_3 = arith.constant 0 : index
    %c0_4 = arith.constant 0 : index
    %3 = vector.load %arg5[%c0_3, %c0_4] : memref<1x128xf32, #tpu.memory_space<vmem>>, vector<1x128xf32>
    %4 = vector.broadcast %3 : vector<1x128xf32> to vector<8x128xf32>
    %5 = arith.addf %2, %4 : vector<8x128xf32>
    %cst_5 = arith.constant 0.000000e+00 : f32
    %6 = vector.broadcast %cst_5 : f32 to vector<8x128xf32>
    %7 = arith.maximumf %5, %6 : vector<8x128xf32>
    %c0_6 = arith.constant 0 : index
    %c0_7 = arith.constant 0 : index
    %8 = vector.load %arg3[%c0_6, %c0_7] : memref<128x128xf32, #tpu.memory_space<vmem>>, vector<128x128xf32>
    %cst_8 = arith.constant dense<0.000000e+00> : vector<8x128xf32>
    %9 = tpu.matmul %7, %8, %cst_8 {dimension_numbers = #tpu.dot_dimension_numbers<[1], [0], [0], [1], [0, 0, 1, 1], [], []>} : vector<8x128xf32>, vector<128x128xf32>, vector<8x128xf32> -> vector<8x128xf32>
    %c0_9 = arith.constant 0 : index
    %c0_10 = arith.constant 0 : index
    %10 = vector.load %arg6[%c0_9, %c0_10] : memref<1x128xf32, #tpu.memory_space<vmem>>, vector<1x128xf32>
    %11 = vector.broadcast %10 : vector<1x128xf32> to vector<8x128xf32>
    %12 = arith.addf %9, %11 : vector<8x128xf32>
    %cst_11 = arith.constant 0.000000e+00 : f32
    %13 = vector.broadcast %cst_11 : f32 to vector<8x128xf32>
    %14 = arith.maximumf %12, %13 : vector<8x128xf32>
    %c0_12 = arith.constant 0 : index
    %c0_13 = arith.constant 0 : index
    %15 = vector.load %arg4[%c0_12, %c0_13] : memref<128x128xf32, #tpu.memory_space<vmem>>, vector<128x128xf32>
    %cst_14 = arith.constant dense<0.000000e+00> : vector<8x128xf32>
    %16 = tpu.matmul %14, %15, %cst_14 {dimension_numbers = #tpu.dot_dimension_numbers<[1], [0], [0], [1], [0, 0, 1, 1], [], []>} : vector<8x128xf32>, vector<128x128xf32>, vector<8x128xf32> -> vector<8x128xf32>
    %c0_15 = arith.constant 0 : index
    %c0_16 = arith.constant 0 : index
    %17 = vector.load %arg7[%c0_15, %c0_16] : memref<1x128xf32, #tpu.memory_space<vmem>>, vector<1x128xf32>
    %18 = vector.broadcast %17 : vector<1x128xf32> to vector<8x128xf32>
    %19 = arith.addf %16, %18 : vector<8x128xf32>
    %c0_17 = arith.constant 0 : index
    %c0_18 = arith.constant 0 : index
    %20 = vector.load %arg8[%c0_17, %c0_18] : memref<8x128xf32, #tpu.memory_space<vmem>>, vector<8x128xf32>
    tpu.vector_store %arg8[%c0_17, %c0_18], %19 {strides = array<i32>} : memref<8x128xf32, #tpu.memory_space<vmem>>, vector<8x128xf32>,
    return
  }
  func.func @transform_0(%arg0: i32) -> (i32, i32) {
    %c0_i32 = arith.constant 0 : i32
    %c0_i32_0 = arith.constant 0 : i32
    return %arg0, %c0_i32 : i32, i32
  }
  func.func @transform_1(%arg0: i32) -> (i32, i32) {
    %c0_i32 = arith.constant 0 : i32
    %c0_i32_0 = arith.constant 0 : i32
    %c0_i32_1 = arith.constant 0 : i32
    return %c0_i32, %c0_i32_0 : i32, i32
  }
  func.func @transform_2(%arg0: i32) -> (i32, i32) {
    %c0_i32 = arith.constant 0 : i32
    %c0_i32_0 = arith.constant 0 : i32
    %c0_i32_1 = arith.constant 0 : i32
    return %c0_i32, %c0_i32_0 : i32, i32
  }
  func.func @transform_3(%arg0: i32) -> (i32, i32) {
    %c0_i32 = arith.constant 0 : i32
    %c0_i32_0 = arith.constant 0 : i32
    %c0_i32_1 = arith.constant 0 : i32
    return %c0_i32, %c0_i32_0 : i32, i32
  }
  func.func @transform_4(%arg0: i32) -> (i32, i32) {
    %c0_i32 = arith.constant 0 : i32
    %c0_i32_0 = arith.constant 0 : i32
    %c0_i32_1 = arith.constant 0 : i32
    return %c0_i32, %c0_i32_0 : i32, i32
  }
  func.func @transform_5(%arg0: i32) -> (i32, i32) {
    %c0_i32 = arith.constant 0 : i32
    %c0_i32_0 = arith.constant 0 : i32
    %c0_i32_1 = arith.constant 0 : i32
    return %c0_i32, %c0_i32_0 : i32, i32
  }
  func.func @transform_6(%arg0: i32) -> (i32, i32) {
    %c0_i32 = arith.constant 0 : i32
    %c0_i32_0 = arith.constant 0 : i32
    %c0_i32_1 = arith.constant 0 : i32
    return %c0_i32, %c0_i32_0 : i32, i32
  }
  func.func @transform_7(%arg0: i32) -> (i32, i32) {
    %c0_i32 = arith.constant 0 : i32
    %c0_i32_0 = arith.constant 0 : i32
    return %arg0, %c0_i32 : i32, i32
  }
}

module attributes {stable_mosaic.version = 11 : i64} {
  func.func @_encoder_kernel(%arg0: i32, %arg1: memref<8x128xf32, #tpu.memory_space<vmem>>, %arg2: memref<128x128xf32, #tpu.memory_space<vmem>>, %arg3: memref<128x128xf32, #tpu.memory_space<vmem>>, %arg4: memref<128x128xf32, #tpu.memory_space<vmem>>, %arg5: memref<1x128xf32, #tpu.memory_space<vmem>>, %arg6: memref<1x128xf32, #tpu.memory_space<vmem>>, %arg7: memref<1x128xf32, #tpu.memory_space<vmem>>, %arg8: memref<8x128xf32, #tpu.memory_space<vmem>>) attributes {dimension_semantics = [#tpu.dimension_semantics<parallel>], iteration_bounds = array<i64: 1>, scalar_prefetch = 0 : i64, scratch_operands = 0 : i64, tpu.core_type = #tpu.core_type<tc>, window_params = [{transform_indices = @transform_0, window_bounds = array<i64: 8, 128>}, {pipeline_mode = #tpu.pipeline_mode<synchronous>, transform_indices = @transform_1, window_bounds = array<i64: 128, 128>}, {pipeline_mode = #tpu.pipeline_mode<synchronous>, transform_indices = @transform_2, window_bounds = array<i64: 128, 128>}, {pipeline_mode = #tpu.pipeline_mode<synchronous>, transform_indices = @transform_3, window_bounds = array<i64: 128, 128>}, {pipeline_mode = #tpu.pipeline_mode<synchronous>, transform_indices = @transform_4, window_bounds = array<i64: 1, 128>}, {pipeline_mode = #tpu.pipeline_mode<synchronous>, transform_indices = @transform_5, window_bounds = array<i64: 1, 128>}, {pipeline_mode = #tpu.pipeline_mode<synchronous>, transform_indices = @transform_6, window_bounds = array<i64: 1, 128>}, {transform_indices = @transform_7, window_bounds = array<i64: 8, 128>}]} {
    %c0 = arith.constant 0 : index
    %c0_0 = arith.constant 0 : index
    %0 = vector.load %arg1[%c0, %c0_0] : memref<8x128xf32, #tpu.memory_space<vmem>>, vector<8x128xf32>
    %c0_1 = arith.constant 0 : index
    %c0_2 = arith.constant 0 : index
    %1 = vector.load %arg2[%c0_1, %c0_2] : memref<128x128xf32, #tpu.memory_space<vmem>>, vector<128x128xf32>
    %cst = arith.constant dense<0.000000e+00> : vector<8x128xf32>
    %2 = tpu.matmul %0, %1, %cst {dimension_numbers = #tpu.dot_dimension_numbers<[1], [0], [0], [1], [0, 0, 1, 1], [], []>} : vector<8x128xf32>, vector<128x128xf32>, vector<8x128xf32> -> vector<8x128xf32>
    %c0_3 = arith.constant 0 : index
    %c0_4 = arith.constant 0 : index
    %3 = vector.load %arg5[%c0_3, %c0_4] : memref<1x128xf32, #tpu.memory_space<vmem>>, vector<1x128xf32>
    %4 = vector.broadcast %3 : vector<1x128xf32> to vector<8x128xf32>
    %5 = arith.addf %2, %4 : vector<8x128xf32>
    %cst_5 = arith.constant 0.000000e+00 : f32
    %6 = vector.broadcast %cst_5 : f32 to vector<8x128xf32>
    %7 = arith.maximumf %5, %6 : vector<8x128xf32>
    %c0_6 = arith.constant 0 : index
    %c0_7 = arith.constant 0 : index
    %8 = vector.load %arg3[%c0_6, %c0_7] : memref<128x128xf32, #tpu.memory_space<vmem>>, vector<128x128xf32>
    %cst_8 = arith.constant dense<0.000000e+00> : vector<8x128xf32>
    %9 = tpu.matmul %7, %8, %cst_8 {dimension_numbers = #tpu.dot_dimension_numbers<[1], [0], [0], [1], [0, 0, 1, 1], [], []>} : vector<8x128xf32>, vector<128x128xf32>, vector<8x128xf32> -> vector<8x128xf32>
    %c0_9 = arith.constant 0 : index
    %c0_10 = arith.constant 0 : index
    %10 = vector.load %arg6[%c0_9, %c0_10] : memref<1x128xf32, #tpu.memory_space<vmem>>, vector<1x128xf32>
    %11 = vector.broadcast %10 : vector<1x128xf32> to vector<8x128xf32>
    %12 = arith.addf %9, %11 : vector<8x128xf32>
    %cst_11 = arith.constant 0.000000e+00 : f32
    %13 = vector.broadcast %cst_11 : f32 to vector<8x128xf32>
    %14 = arith.maximumf %12, %13 : vector<8x128xf32>
    %c0_12 = arith.constant 0 : index
    %c0_13 = arith.constant 0 : index
    %15 = vector.load %arg4[%c0_12, %c0_13] : memref<128x128xf32, #tpu.memory_space<vmem>>, vector<128x128xf32>
    %cst_14 = arith.constant dense<0.000000e+00> : vector<8x128xf32>
    %16 = tpu.matmul %14, %15, %cst_14 {dimension_numbers = #tpu.dot_dimension_numbers<[1], [0], [0], [1], [0, 0, 1, 1], [], []>} : vector<8x128xf32>, vector<128x128xf32>, vector<8x128xf32> -> vector<8x128xf32>
    %c0_15 = arith.constant 0 : index
    %c0_16 = arith.constant 0 : index
    %17 = vector.load %arg7[%c0_15, %c0_16] : memref<1x128xf32, #tpu.memory_space<vmem>>, vector<1x128xf32>
    %18 = vector.broadcast %17 : vector<1x128xf32> to vector<8x128xf32>
    %19 = arith.addf %16, %18 : vector<8x128xf32>
    %c0_17 = arith.constant 0 : index
    %c0_18 = arith.constant 0 : index
    %20 = vector.load %arg8[%c0_17, %c0_18] : memref<8x128xf32, #tpu.memory_space<vmem>>, vector<8x128xf32>
    tpu.vector_store %arg8[%c0_17, %c0_18], %19 {strides = array<i32>} : memref<8x128xf32, #tpu.memory_space<vmem>>, vector<8x128xf32>,
    return
  }
  func.func @transform_0(%arg0: i32) -> (i32, i32) {
    %c0_i32 = arith.constant 0 : i32
    %c0_i32_0 = arith.constant 0 : i32
    return %arg0, %c0_i32 : i32, i32
  }
  func.func @transform_1(%arg0: i32) -> (i32, i32) {
    %c0_i32 = arith.constant 0 : i32
    %c0_i32_0 = arith.constant 0 : i32
    %c0_i32_1 = arith.constant 0 : i32
    return %c0_i32, %c0_i32_0 : i32, i32
  }
  func.func @transform_2(%arg0: i32) -> (i32, i32) {
    %c0_i32 = arith.constant 0 : i32
    %c0_i32_0 = arith.constant 0 : i32
    %c0_i32_1 = arith.constant 0 : i32
    return %c0_i32, %c0_i32_0 : i32, i32
  }
  func.func @transform_3(%arg0: i32) -> (i32, i32) {
    %c0_i32 = arith.constant 0 : i32
    %c0_i32_0 = arith.constant 0 : i32
    %c0_i32_1 = arith.constant 0 : i32
    return %c0_i32, %c0_i32_0 : i32, i32
  }
  func.func @transform_4(%arg0: i32) -> (i32, i32) {
    %c0_i32 = arith.constant 0 : i32
    %c0_i32_0 = arith.constant 0 : i32
    %c0_i32_1 = arith.constant 0 : i32
    return %c0_i32, %c0_i32_0 : i32, i32
  }
  func.func @transform_5(%arg0: i32) -> (i32, i32) {
    %c0_i32 = arith.constant 0 : i32
    %c0_i32_0 = arith.constant 0 : i32
    %c0_i32_1 = arith.constant 0 : i32
    return %c0_i32, %c0_i32_0 : i32, i32
  }
  func.func @transform_6(%arg0: i32) -> (i32, i32) {
    %c0_i32 = arith.constant 0 : i32
    %c0_i32_0 = arith.constant 0 : i32
    %c0_i32_1 = arith.constant 0 : i32
    return %c0_i32, %c0_i32_0 : i32, i32
  }
  func.func @transform_7(%arg0: i32) -> (i32, i32) {
    %c0_i32 = arith.constant 0 : i32
    %c0_i32_0 = arith.constant 0 : i32
    return %arg0, %c0_i32 : i32, i32
  }
}

</mosaic_0001>

<bundles_post_ra>
// kernel: _encoder_forward_impl.1
= control target key start
LH: loop header
LB: loop body
LE: loop exit
PB: predicated region body
PF: predicated region fallthrough
CT: control target
= control target key end

     0   :  { %12 = vsyncpa [#allocation3], 0  ;;  %s356_s0 = inlined_call_operand.vmem [shape: f32[8,128], index: 0, kind: input, shape index: {}]   ;;  %s357_s1 = inlined_call_operand.hbm [shape: f32[128,128], index: 1, kind: input, shape index: {}]   ;;  %s358_s2 = inlined_call_operand.hbm [shape: f32[128,128], index: 2, kind: input, shape index: {}]   ;;  %s359_s3 = inlined_call_operand.hbm [shape: f32[128,128], index: 3, kind: input, shape index: {}]   ;;  %s360_s4 = inlined_call_operand.vmem [shape: f32[1,128], index: 4, kind: input, shape index: {}]   ;;  %s361_s5 = inlined_call_operand.vmem [shape: f32[1,128], index: 5, kind: input, shape index: {}]   ;;  %s362_s6 = inlined_call_operand.vmem [shape: f32[1,128], index: 6, kind: input, shape index: {}]   ;;  %s363_s7 = inlined_call_operand.vmem [shape: f32[8,128], index: 7, kind: output, shape index: {}]  }
   0x1   :  { %13 = vsyncpa [#allocation5], 0  ;;  %s33_s26 = sshll.u32 %s358_s2, 4  ;;  %s287_s27 = smov [#allocation4]   ;;  %s34_s26 = int_to_ptr.hbm [resolvable:$true] %s33_s26 }
   0x2   :  { %s35_s28 = sshll.u32 %s287_s27, 4  ;;  %s20_s8 = sshll.u32 %s357_s1, 4  ;;  %s36_s28 = int_to_ptr.vmem [resolvable:$true] %s35_s28  ;;  %s21_s8 = int_to_ptr.hbm [resolvable:$true] %s20_s8 }
   0x3   :  { %s288_s9 = smov 128   ;;  %s289_s10 = smov 8  }
   0x4   :  { %41 = dma.hbm_to_vmem [thread:$0]  %s34_s26, 2048, %s36_s28, [#allocation5], %s288_s9, %s288_s9, %s289_s10  }
   0x5   :  { %s290_s11 = smov [#allocation2]   ;;  %s46_s15 = sshll.u32 %s359_s3, 4  ;;  %s47_s15 = int_to_ptr.hbm [resolvable:$true] %s46_s15 }
   0x6   :  { %s22_s12 = sshll.u32 %s290_s11, 4  ;;  %s291_s2 = smov [#allocation6]   ;;  %s23_s12 = int_to_ptr.vmem [resolvable:$true] %s22_s12 }
   0x7   :  { %28 = dma.hbm_to_vmem [thread:$0]  %s21_s8, 2048, %s23_s12, [#allocation3], %s288_s9, %s288_s9, %s289_s10  }
   0x8   :  { %s48_s16 = sshll.u32 %s291_s2, 4  ;;  %s49_s16 = int_to_ptr.vmem [resolvable:$true] %s48_s16 }
   0x9   :  { %54 = dma.hbm_to_vmem [thread:$0]  %s47_s15, 2048, %s49_s16, [#allocation5], %s288_s9, %s288_s9, %s289_s10  }
   0xa   :  { %283 = dma.done.wait [#allocation3], 2048  }
   0xb   :  { %284 = vsyncadd [#allocation3], 4294965248 }
   0xc   :  { %285 = dma.done.wait [#allocation5], 4096  }
   0xd   :  { %286 = vsyncadd [#allocation5], 4294963200  ;;  %v89_v0 = vld [vmem:[#allocation2 + $0x78] sm:$0xff]  ;;  %v88_v1 = vld [vmem:[#allocation2 + $0x70] sm:$0xff] }
   0xe   :  { %94 = vmatpush.msra.mxu0 %v89_v0  ;;  %v87_v2 = vld [vmem:[#allocation2 + $0x68] sm:$0xff]  ;;  %v86_v3 = vld [vmem:[#allocation2 + $0x60] sm:$0xff]  ;;  %v130_v4 = vld [vmem:[#allocation4 + $0x78] sm:$0xff] }
   0xf   :  { %v85_v5 = vld [vmem:[#allocation2 + $0x58] sm:$0xff]  ;;  %135 = vmatpush.msra.mxu1 %v130_v4  ;;  %v129_v6 = vld [vmem:[#allocation4 + $0x70] sm:$0xff]  ;;  %v128_v7 = vld [vmem:[#allocation4 + $0x68] sm:$0xff] }
  0x10   :  { %95 = vmatpush.msra.mxu0 %v88_v1  ;;  %v84_v8 = vld [vmem:[#allocation2 + $0x50] sm:$0xff]  ;;  %v127_v9 = vld [vmem:[#allocation4 + $0x60] sm:$0xff]  ;;  %v83_v10 = vld [vmem:[#allocation2 + $0x48] sm:$0xff] }
  0x11   :  { %136 = vmatpush.msra.mxu1 %v129_v6  ;;  %v126_v11 = vld [vmem:[#allocation4 + $0x58] sm:$0xff]  ;;  %v82_v12 = vld [vmem:[#allocation2 + $0x40] sm:$0xff]  ;;  %v125_v13 = vld [vmem:[#allocation4 + $0x50] sm:$0xff] }
  0x12   :  { %96 = vmatpush.msra.mxu0 %v87_v2  ;;  %v81_v14 = vld [vmem:[#allocation2 + $0x38] sm:$0xff]  ;;  %v124_v15 = vld [vmem:[#allocation4 + $0x48] sm:$0xff]  ;;  %v80_v16 = vld [vmem:[#allocation2 + $0x30] sm:$0xff] }
  0x13   :  { %137 = vmatpush.msra.mxu1 %v128_v7  ;;  %v123_v17 = vld [vmem:[#allocation4 + $0x40] sm:$0xff]  ;;  %v79_v18 = vld [vmem:[#allocation2 + $0x28] sm:$0xff]  ;;  %v122_v19 = vld [vmem:[#allocation4 + $0x38] sm:$0xff] }
  0x14   :  { %97 = vmatpush.msra.mxu0 %v86_v3  ;;  %v78_v20 = vld [vmem:[#allocation2 + $0x20] sm:$0xff]  ;;  %v121_v21 = vld [vmem:[#allocation4 + $0x30] sm:$0xff]  ;;  %v77_v22 = vld [vmem:[#allocation2 + $0x18] sm:$0xff] }
  0x15   :  { %138 = vmatpush.msra.mxu1 %v127_v9  ;;  %v120_v23 = vld [vmem:[#allocation4 + $0x28] sm:$0xff]  ;;  %v76_v24 = vld [vmem:[#allocation2 + $0x10] sm:$0xff]  ;;  %v119_v25 = vld [vmem:[#allocation4 + $0x20] sm:$0xff] }
  0x16   :  { %98 = vmatpush.msra.mxu0 %v85_v5  ;;  %v75_v26 = vld [vmem:[#allocation2 + $0x8] sm:$0xff]  ;;  %v118_v27 = vld [vmem:[#allocation4 + $0x18] sm:$0xff]  ;;  %v74_v28 = vld [vmem:[#allocation2] sm:$0xff] }
  0x17   :  { %139 = vmatpush.msra.mxu1 %v126_v11  ;;  %v73_v29 = vld [vmem:[%s356_s0] sm:$0xff]  ;;  %v117_v30 = vld [vmem:[#allocation4 + $0x10] sm:$0xff]  ;;  %v116_v31 = vld [vmem:[#allocation4 + $0x8] sm:$0xff] }
  0x18   :  { %99 = vmatpush.msra.mxu0 %v84_v8  ;;  %v115_v32 = vld [vmem:[#allocation4] sm:$0xff]  ;;  %v171_v33 = vld [vmem:[#allocation6 + $0x78] sm:$0xff]  ;;  %v170_v34 = vld [vmem:[#allocation6 + $0x70] sm:$0xff] }
  0x19   :  { %140 = vmatpush.msra.mxu1 %v125_v13  ;;  %176 = vmatpush.msra.mxu2 %v171_v33  ;;  %v169_v35 = vld [vmem:[#allocation6 + $0x68] sm:$0xff]  ;;  %v168_v36 = vld [vmem:[#allocation6 + $0x60] sm:$0xff]  ;;  %v167_v37 = vld [vmem:[#allocation6 + $0x58] sm:$0xff] }
  0x1a   :  { %100 = vmatpush.msra.mxu0 %v83_v10  ;;  %v166_v38 = vld [vmem:[#allocation6 + $0x50] sm:$0xff]  ;;  %v165_v39 = vld [vmem:[#allocation6 + $0x48] sm:$0xff]  ;;  %v164_v40 = vld [vmem:[#allocation6 + $0x40] sm:$0xff] }
  0x1b   :  { %141 = vmatpush.msra.mxu1 %v124_v15  ;;  %177 = vmatpush.msra.mxu2 %v170_v34  ;;  %v163_v41 = vld [vmem:[#allocation6 + $0x38] sm:$0xff]  ;;  %v162_v42 = vld [vmem:[#allocation6 + $0x30] sm:$0xff]  ;;  %v161_v43 = vld [vmem:[#allocation6 + $0x28] sm:$0xff] }
  0x1c   :  { %101 = vmatpush.msra.mxu0 %v82_v12  ;;  %v160_v44 = vld [vmem:[#allocation6 + $0x20] sm:$0xff]  ;;  %v159_v45 = vld [vmem:[#allocation6 + $0x18] sm:$0xff]  ;;  %v158_v50 = vld [vmem:[#allocation6 + $0x10] sm:$0xff] }
  0x1d   :  { %142 = vmatpush.msra.mxu1 %v123_v17  ;;  %178 = vmatpush.msra.mxu2 %v169_v35  ;;  %v208_v46 = vld [vmem:[%s360_s4] ss:$0 sm:$0xff]  ;;  %v157_v51 = vld [vmem:[#allocation6 + $0x8] sm:$0xff] }
  0x1e   :  { %102 = vmatpush.msra.mxu0 %v81_v14  ;;  %v156_v52 = vld [vmem:[#allocation6] sm:$0xff] }
  0x1f   :  { %143 = vmatpush.msra.mxu1 %v122_v19  ;;  %179 = vmatpush.msra.mxu2 %v168_v36  ;;  %v209_v53 = vld [vmem:[%s361_s5] ss:$0 sm:$0xff] }
  0x20   :  { %103 = vmatpush.msra.mxu0 %v80_v16  ;;  %v210_v57 = vld [vmem:[%s362_s6] ss:$0 sm:$0xff] }
  0x21   :  { %144 = vmatpush.msra.mxu1 %v121_v21  ;;  %180 = vmatpush.msra.mxu2 %v167_v37 }
  0x22   :  { %104 = vmatpush.msra.mxu0 %v79_v18 }
  0x23   :  { %145 = vmatpush.msra.mxu1 %v120_v23  ;;  %181 = vmatpush.msra.mxu2 %v166_v38 }
  0x24   :  { %105 = vmatpush.msra.mxu0 %v78_v20 }
  0x25   :  { %146 = vmatpush.msra.mxu1 %v119_v25  ;;  %182 = vmatpush.msra.mxu2 %v165_v39 }
  0x26   :  { %106 = vmatpush.msra.mxu0 %v77_v22 }
  0x27   :  { %147 = vmatpush.msra.mxu1 %v118_v27  ;;  %183 = vmatpush.msra.mxu2 %v164_v40 }
  0x28   :  { %107 = vmatpush.msra.mxu0 %v76_v24 }
  0x29   :  { %148 = vmatpush.msra.mxu1 %v117_v30  ;;  %184 = vmatpush.msra.mxu2 %v163_v41 }
  0x2a   :  { %108 = vmatpush.msra.mxu0 %v75_v26 }
  0x2b   :  { %149 = vmatpush.msra.mxu1 %v116_v31  ;;  %185 = vmatpush.msra.mxu2 %v162_v42 }
  0x2c   :  { %109 = vmatpush.msra.mxu0 %v74_v28 }
  0x2d   :  { %110 = vmatmul.f32.vlgmr.msra.gmra.mxu0 %v73_v29  ;;  %150 = vmatpush.msra.mxu1 %v115_v32 }
  0x2e   :  { %186 = vmatpush.msra.mxu2 %v161_v43 }
  0x30   :  { %187 = vmatpush.msra.mxu2 %v160_v44 }
  0x32   :  { %188 = vmatpush.msra.mxu2 %v159_v45 }
  0x34   :  { %189 = vmatpush.msra.mxu2 %v158_v50 }
  0x36   :  { %190 = vmatpush.msra.mxu2 %v157_v51 }
  0x38   :  { %191 = vmatpush.msra.mxu2 %v156_v52 }
  0xaa   :  { %v111_v47 = vpop.f32.mrf.mxu0 }
  0xab   :  { %v112_v48 = vadd.f32 %v208_v46, %v111_v47 }
  0xad   :  { %v114_v49 = vmax.f32 %v112_v48, 0.0 }
  0xaf   :  { %151 = vmatmul.f32.vlgmr.msra.gmra.mxu1 %v114_v49 }
 0x12c   :  { %v152_v54 = vpop.f32.mrf.mxu1 }
 0x12d   :  { %v153_v55 = vadd.f32 %v209_v53, %v152_v54 }
 0x12f   :  { %v155_v56 = vmax.f32 %v153_v55, 0.0 }
 0x131   :  { %192 = vmatmul.f32.vlgmr.msra.gmra.mxu2 %v155_v56 }
 0x1b4   :  { %v193_v58 = vpop.f32.mrf.mxu2 }
 0x1b5   :  { %v194_v59 = vadd.f32 %v210_v57, %v193_v58 }
 0x1b7   :  { %196 = vst [vmem:[%s363_s7] sm:$0xff] %v194_v59 }
 0x1b8   :  { %201 = vsyncpa [#allocation3], 1 }
 0x1b9   :  { %202 = vsyncpa [#allocation5], 1 }

// kernel: _encoder_forward_impl.1
= control target key start
LH: loop header
LB: loop body
LE: loop exit
PB: predicated region body
PF: predicated region fallthrough
CT: control target
= control target key end

     0   :  { %12 = vsyncpa [#allocation3], 0  ;;  %s356_s0 = inlined_call_operand.vmem [shape: f32[8,128], index: 0, kind: input, shape index: {}]   ;;  %s357_s1 = inlined_call_operand.hbm [shape: f32[128,128], index: 1, kind: input, shape index: {}]   ;;  %s358_s2 = inlined_call_operand.hbm [shape: f32[128,128], index: 2, kind: input, shape index: {}]   ;;  %s359_s3 = inlined_call_operand.hbm [shape: f32[128,128], index: 3, kind: input, shape index: {}]   ;;  %s360_s4 = inlined_call_operand.vmem [shape: f32[1,128], index: 4, kind: input, shape index: {}]   ;;  %s361_s5 = inlined_call_operand.vmem [shape: f32[1,128], index: 5, kind: input, shape index: {}]   ;;  %s362_s6 = inlined_call_operand.vmem [shape: f32[1,128], index: 6, kind: input, shape index: {}]   ;;  %s363_s7 = inlined_call_operand.vmem [shape: f32[8,128], index: 7, kind: output, shape index: {}]  }
   0x1   :  { %13 = vsyncpa [#allocation5], 0  ;;  %s33_s26 = sshll.u32 %s358_s2, 4  ;;  %s287_s27 = smov [#allocation4]   ;;  %s34_s26 = int_to_ptr.hbm [resolvable:$true] %s33_s26 }
   0x2   :  { %s35_s28 = sshll.u32 %s287_s27, 4  ;;  %s20_s8 = sshll.u32 %s357_s1, 4  ;;  %s36_s28 = int_to_ptr.vmem [resolvable:$true] %s35_s28  ;;  %s21_s8 = int_to_ptr.hbm [resolvable:$true] %s20_s8 }
   0x3   :  { %s288_s9 = smov 128   ;;  %s289_s10 = smov 8  }
   0x4   :  { %41 = dma.hbm_to_vmem [thread:$0]  %s34_s26, 2048, %s36_s28, [#allocation5], %s288_s9, %s288_s9, %s289_s10  }
   0x5   :  { %s290_s11 = smov [#allocation2]   ;;  %s46_s15 = sshll.u32 %s359_s3, 4  ;;  %s47_s15 = int_to_ptr.hbm [resolvable:$true] %s46_s15 }
   0x6   :  { %s22_s12 = sshll.u32 %s290_s11, 4  ;;  %s291_s2 = smov [#allocation6]   ;;  %s23_s12 = int_to_ptr.vmem [resolvable:$true] %s22_s12 }
   0x7   :  { %28 = dma.hbm_to_vmem [thread:$0]  %s21_s8, 2048, %s23_s12, [#allocation3], %s288_s9, %s288_s9, %s289_s10  }
   0x8   :  { %s48_s16 = sshll.u32 %s291_s2, 4  ;;  %s49_s16 = int_to_ptr.vmem [resolvable:$true] %s48_s16 }
   0x9   :  { %54 = dma.hbm_to_vmem [thread:$0]  %s47_s15, 2048, %s49_s16, [#allocation5], %s288_s9, %s288_s9, %s289_s10  }
   0xa   :  { %283 = dma.done.wait [#allocation3], 2048  }
   0xb   :  { %284 = vsyncadd [#allocation3], 4294965248 }
   0xc   :  { %285 = dma.done.wait [#allocation5], 4096  }
   0xd   :  { %286 = vsyncadd [#allocation5], 4294963200  ;;  %v89_v0 = vld [vmem:[#allocation2 + $0x78] sm:$0xff]  ;;  %v88_v1 = vld [vmem:[#allocation2 + $0x70] sm:$0xff] }
   0xe   :  { %94 = vmatpush.msra.mxu0 %v89_v0  ;;  %v87_v2 = vld [vmem:[#allocation2 + $0x68] sm:$0xff]  ;;  %v86_v3 = vld [vmem:[#allocation2 + $0x60] sm:$0xff]  ;;  %v130_v4 = vld [vmem:[#allocation4 + $0x78] sm:$0xff] }
   0xf   :  { %v85_v5 = vld [vmem:[#allocation2 + $0x58] sm:$0xff]  ;;  %135 = vmatpush.msra.mxu1 %v130_v4  ;;  %v129_v6 = vld [vmem:[#allocation4 + $0x70] sm:$0xff]  ;;  %v128_v7 = vld [vmem:[#allocation4 + $0x68] sm:$0xff] }
  0x10   :  { %95 = vmatpush.msra.mxu0 %v88_v1  ;;  %v84_v8 = vld [vmem:[#allocation2 + $0x50] sm:$0xff]  ;;  %v127_v9 = vld [vmem:[#allocation4 + $0x60] sm:$0xff]  ;;  %v83_v10 = vld [vmem:[#allocation2 + $0x48] sm:$0xff] }
  0x11   :  { %136 = vmatpush.msra.mxu1 %v129_v6  ;;  %v126_v11 = vld [vmem:[#allocation4 + $0x58] sm:$0xff]  ;;  %v82_v12 = vld [vmem:[#allocation2 + $0x40] sm:$0xff]  ;;  %v125_v13 = vld [vmem:[#allocation4 + $0x50] sm:$0xff] }
  0x12   :  { %96 = vmatpush.msra.mxu0 %v87_v2  ;;  %v81_v14 = vld [vmem:[#allocation2 + $0x38] sm:$0xff]  ;;  %v124_v15 = vld [vmem:[#allocation4 + $0x48] sm:$0xff]  ;;  %v80_v16 = vld [vmem:[#allocation2 + $0x30] sm:$0xff] }
  0x13   :  { %137 = vmatpush.msra.mxu1 %v128_v7  ;;  %v123_v17 = vld [vmem:[#allocation4 + $0x40] sm:$0xff]  ;;  %v79_v18 = vld [vmem:[#allocation2 + $0x28] sm:$0xff]  ;;  %v122_v19 = vld [vmem:[#allocation4 + $0x38] sm:$0xff] }
  0x14   :  { %97 = vmatpush.msra.mxu0 %v86_v3  ;;  %v78_v20 = vld [vmem:[#allocation2 + $0x20] sm:$0xff]  ;;  %v121_v21 = vld [vmem:[#allocation4 + $0x30] sm:$0xff]  ;;  %v77_v22 = vld [vmem:[#allocation2 + $0x18] sm:$0xff] }
  0x15   :  { %138 = vmatpush.msra.mxu1 %v127_v9  ;;  %v120_v23 = vld [vmem:[#allocation4 + $0x28] sm:$0xff]  ;;  %v76_v24 = vld [vmem:[#allocation2 + $0x10] sm:$0xff]  ;;  %v119_v25 = vld [vmem:[#allocation4 + $0x20] sm:$0xff] }
  0x16   :  { %98 = vmatpush.msra.mxu0 %v85_v5  ;;  %v75_v26 = vld [vmem:[#allocation2 + $0x8] sm:$0xff]  ;;  %v118_v27 = vld [vmem:[#allocation4 + $0x18] sm:$0xff]  ;;  %v74_v28 = vld [vmem:[#allocation2] sm:$0xff] }
  0x17   :  { %139 = vmatpush.msra.mxu1 %v126_v11  ;;  %v73_v29 = vld [vmem:[%s356_s0] sm:$0xff]  ;;  %v117_v30 = vld [vmem:[#allocation4 + $0x10] sm:$0xff]  ;;  %v116_v31 = vld [vmem:[#allocation4 + $0x8] sm:$0xff] }
  0x18   :  { %99 = vmatpush.msra.mxu0 %v84_v8  ;;  %v115_v32 = vld [vmem:[#allocation4] sm:$0xff]  ;;  %v171_v33 = vld [vmem:[#allocation6 + $0x78] sm:$0xff]  ;;  %v170_v34 = vld [vmem:[#allocation6 + $0x70] sm:$0xff] }
  0x19   :  { %140 = vmatpush.msra.mxu1 %v125_v13  ;;  %176 = vmatpush.msra.mxu2 %v171_v33  ;;  %v169_v35 = vld [vmem:[#allocation6 + $0x68] sm:$0xff]  ;;  %v168_v36 = vld [vmem:[#allocation6 + $0x60] sm:$0xff]  ;;  %v167_v37 = vld [vmem:[#allocation6 + $0x58] sm:$0xff] }
  0x1a   :  { %100 = vmatpush.msra.mxu0 %v83_v10  ;;  %v166_v38 = vld [vmem:[#allocation6 + $0x50] sm:$0xff]  ;;  %v165_v39 = vld [vmem:[#allocation6 + $0x48] sm:$0xff]  ;;  %v164_v40 = vld [vmem:[#allocation6 + $0x40] sm:$0xff] }
  0x1b   :  { %141 = vmatpush.msra.mxu1 %v124_v15  ;;  %177 = vmatpush.msra.mxu2 %v170_v34  ;;  %v163_v41 = vld [vmem:[#allocation6 + $0x38] sm:$0xff]  ;;  %v162_v42 = vld [vmem:[#allocation6 + $0x30] sm:$0xff]  ;;  %v161_v43 = vld [vmem:[#allocation6 + $0x28] sm:$0xff] }
  0x1c   :  { %101 = vmatpush.msra.mxu0 %v82_v12  ;;  %v160_v44 = vld [vmem:[#allocation6 + $0x20] sm:$0xff]  ;;  %v159_v45 = vld [vmem:[#allocation6 + $0x18] sm:$0xff]  ;;  %v158_v50 = vld [vmem:[#allocation6 + $0x10] sm:$0xff] }
  0x1d   :  { %142 = vmatpush.msra.mxu1 %v123_v17  ;;  %178 = vmatpush.msra.mxu2 %v169_v35  ;;  %v208_v46 = vld [vmem:[%s360_s4] ss:$0 sm:$0xff]  ;;  %v157_v51 = vld [vmem:[#allocation6 + $0x8] sm:$0xff] }
  0x1e   :  { %102 = vmatpush.msra.mxu0 %v81_v14  ;;  %v156_v52 = vld [vmem:[#allocation6] sm:$0xff] }
  0x1f   :  { %143 = vmatpush.msra.mxu1 %v122_v19  ;;  %179 = vmatpush.msra.mxu2 %v168_v36  ;;  %v209_v53 = vld [vmem:[%s361_s5] ss:$0 sm:$0xff] }
  0x20   :  { %103 = vmatpush.msra.mxu0 %v80_v16  ;;  %v210_v57 = vld [vmem:[%s362_s6] ss:$0 sm:$0xff] }
  0x21   :  { %144 = vmatpush.msra.mxu1 %v121_v21  ;;  %180 = vmatpush.msra.mxu2 %v167_v37 }
  0x22   :  { %104 = vmatpush.msra.mxu0 %v79_v18 }
  0x23   :  { %145 = vmatpush.msra.mxu1 %v120_v23  ;;  %181 = vmatpush.msra.mxu2 %v166_v38 }
  0x24   :  { %105 = vmatpush.msra.mxu0 %v78_v20 }
  0x25   :  { %146 = vmatpush.msra.mxu1 %v119_v25  ;;  %182 = vmatpush.msra.mxu2 %v165_v39 }
  0x26   :  { %106 = vmatpush.msra.mxu0 %v77_v22 }
  0x27   :  { %147 = vmatpush.msra.mxu1 %v118_v27  ;;  %183 = vmatpush.msra.mxu2 %v164_v40 }
  0x28   :  { %107 = vmatpush.msra.mxu0 %v76_v24 }
  0x29   :  { %148 = vmatpush.msra.mxu1 %v117_v30  ;;  %184 = vmatpush.msra.mxu2 %v163_v41 }
  0x2a   :  { %108 = vmatpush.msra.mxu0 %v75_v26 }
  0x2b   :  { %149 = vmatpush.msra.mxu1 %v116_v31  ;;  %185 = vmatpush.msra.mxu2 %v162_v42 }
  0x2c   :  { %109 = vmatpush.msra.mxu0 %v74_v28 }
  0x2d   :  { %110 = vmatmul.f32.vlgmr.msra.gmra.mxu0 %v73_v29  ;;  %150 = vmatpush.msra.mxu1 %v115_v32 }
  0x2e   :  { %186 = vmatpush.msra.mxu2 %v161_v43 }
  0x30   :  { %187 = vmatpush.msra.mxu2 %v160_v44 }
  0x32   :  { %188 = vmatpush.msra.mxu2 %v159_v45 }
  0x34   :  { %189 = vmatpush.msra.mxu2 %v158_v50 }
  0x36   :  { %190 = vmatpush.msra.mxu2 %v157_v51 }
  0x38   :  { %191 = vmatpush.msra.mxu2 %v156_v52 }
  0xaa   :  { %v111_v47 = vpop.f32.mrf.mxu0 }
  0xab   :  { %v112_v48 = vadd.f32 %v208_v46, %v111_v47 }
  0xad   :  { %v114_v49 = vmax.f32 %v112_v48, 0.0 }
  0xaf   :  { %151 = vmatmul.f32.vlgmr.msra.gmra.mxu1 %v114_v49 }
 0x12c   :  { %v152_v54 = vpop.f32.mrf.mxu1 }
 0x12d   :  { %v153_v55 = vadd.f32 %v209_v53, %v152_v54 }
 0x12f   :  { %v155_v56 = vmax.f32 %v153_v55, 0.0 }
 0x131   :  { %192 = vmatmul.f32.vlgmr.msra.gmra.mxu2 %v155_v56 }
 0x1b4   :  { %v193_v58 = vpop.f32.mrf.mxu2 }
 0x1b5   :  { %v194_v59 = vadd.f32 %v210_v57, %v193_v58 }
 0x1b7   :  { %196 = vst [vmem:[%s363_s7] sm:$0xff] %v194_v59 }
 0x1b8   :  { %201 = vsyncpa [#allocation3], 1 }
 0x1b9   :  { %202 = vsyncpa [#allocation5], 1 }

</bundles_post_ra>
